<compile_context>
chip_gen: v6e
topology: v6e:2x2x1
jax: 0.10.0
libtpu: 0.0.40
codegen_flags: <defaults>
</compile_context>

<pallas_src>
import functools
from typing import NamedTuple

import jax
import jax.numpy as jnp
from jax.experimental import pallas as pl
from jax.experimental.pallas import tpu as pltpu

MACRO_ACTIONS = ['move', 'shoot', 'intercept']
MACRO_ACTIONS_W = ['move', 'shoot']
MACRO_ACTIONS_WO = ['move', 'intercept']

HEADS_W = 16   # fused+padded head width: 8 "with ball" cols | 8 "without ball" cols
HEAD_OUT = 8   # routed head output per row: 3 logits + 2 move + 1 shoot + 2 intercept

_LANE = 128
_VMEM_BUDGET_BYTES = 24 << 20   # per-step tile budget (safe on v7x's 64 MiB VMEM)


def _round_up(n, m):
    return (n + m - 1) // m * m


class PackedParams(NamedTuple):
    """Built once by pack_params(); offsets/dims are static Python ints."""
    slab: jax.Array
    offsets: tuple
    input_dim: int
    hidden_dim: int


def _macro_policy_kernel(D, H, ball_col, include_x, offs,
                         state_ref, p_ref, out_ref):
    """One batch tile: shared MLP + fused heads + dense has_ball routing."""
    rw1, rw2, rwh, rb1, rb2, rbh = offs
    s = state_ref[...]                                   # [TB, D] (f32 or bf16)

    # Static slices of the resident parameter slab (zero-cost ref views).
    w1 = p_ref[rw1:rw1 + D, 0:H]
    w2 = p_ref[rw2:rw2 + H, 0:H]
    wh = p_ref[rwh:rwh + H, 0:HEADS_W]
    b1 = p_ref[rb1:rb1 + 1, 0:H]
    b2 = p_ref[rb2:rb2 + 1, 0:H]
    bh = p_ref[rbh:rbh + 1, 0:HEADS_W]

    # shared: Linear -> ReLU -> Linear -> ReLU.  All accumulation/elementwise
    # math stays f32 even when activation I/O is bf16 (v5e has no bf16 VPU).
    h1 = jnp.maximum(jnp.dot(s, w1, preferred_element_type=jnp.float32) + b1, 0.0)
    h2 = jnp.maximum(jnp.dot(h1, w2, preferred_element_type=jnp.float32) + b2, 0.0)

    # All 6 heads in one [H, 16] matmul.  Column layout:
    #   with-ball block  0:8  = [logit move, logit shoot, (-inf), move0, move1, shoot, 0, 0]
    #   without  block  8:16  = [logit move, (-inf), logit intercept, move0, move1, 0, icpt0, icpt1]
    # (-inf) columns are zero weights with a -inf bias; unused params are zero cols.
    heads = jnp.dot(h2, wh, preferred_element_type=jnp.float32) + bh   # [TB, 16]

    has_ball = s[:, ball_col:ball_col + 1].astype(jnp.float32) == 1.0  # [TB, 1]
    sel = jnp.where(has_ball, heads[:, 0:HEAD_OUT], heads[:, HEAD_OUT:2 * HEAD_OUT])

    if include_x:
        out_ref[:, H:H + HEAD_OUT] = sel.astype(out_ref.dtype)
        out_ref[:, 0:H] = h2.astype(out_ref.dtype)
    else:
        out_ref[...] = sel.astype(out_ref.dtype)


def pack_params(params):
    """Pack every weight/bias into one padded [R, W] f32 slab.

    Build this ONCE (at init / whenever params change) and reuse it for every
    forward call — it is deliberately kept out of the hot path.
    """
    D, H = params['w1'].shape
    W = max(H, HEADS_W)

    # Fused + padded head weight / bias (see column layout in the kernel).
    wh = jnp.zeros((H, HEADS_W), jnp.float32)
    wh = wh.at[:, 0:2].set(params['w_macro_with'])              # with-ball logits
    wh = wh.at[:, 3:5].set(params['w_move_with'])
    wh = wh.at[:, 5:6].set(params['w_shoot'])
    wh = wh.at[:, 8:9].set(params['w_macro_without'][:, 0:1])   # without-ball: move
    wh = wh.at[:, 10:11].set(params['w_macro_without'][:, 1:2]) # without-ball: intercept
    wh = wh.at[:, 11:13].set(params['w_move_without'])
    wh = wh.at[:, 14:16].set(params['w_intercept'])

    bh = jnp.zeros((1, HEADS_W), jnp.float32)
    bh = bh.at[:, 0:2].set(params['b_macro_with'])
    bh = bh.at[0, 2].set(-jnp.inf)                              # intercept masked w/ ball
    bh = bh.at[:, 3:5].set(params['b_move_with'])
    bh = bh.at[:, 5:6].set(params['b_shoot'])
    bh = bh.at[:, 8:9].set(params['b_macro_without'][:, 0:1])
    bh = bh.at[0, 9].set(-jnp.inf)                              # shoot masked w/o ball
    bh = bh.at[:, 10:11].set(params['b_macro_without'][:, 1:2])
    bh = bh.at[:, 11:13].set(params['b_move_without'])
    bh = bh.at[:, 14:16].set(params['b_intercept'])

    # 8-aligned row offsets inside the slab.
    rw1 = 0
    rw2 = _round_up(rw1 + D, 8)
    rwh = _round_up(rw2 + H, 8)
    rb1 = _round_up(rwh + H, 8)
    rb2 = rb1 + 8
    rbh = rb2 + 8
    rows = rbh + 8

    slab = jnp.zeros((rows, W), jnp.float32)
    slab = slab.at[rw1:rw1 + D, 0:H].set(params['w1'])
    slab = slab.at[rw2:rw2 + H, 0:H].set(params['w2'])
    slab = slab.at[rwh:rwh + H, 0:HEADS_W].set(wh)
    slab = slab.at[rb1, 0:H].set(params['b1'][0])
    slab = slab.at[rb2, 0:H].set(params['b2'][0])
    slab = slab.at[rbh, 0:HEADS_W].set(bh[0])
    return PackedParams(slab, (rw1, rw2, rwh, rb1, rb2, rbh), D, H)


def _tile_vmem_bytes(tb, d, out_w, slab_shape, in_itemsize, out_itemsize):
    """Lane-padded, double-buffered per-step VMEM footprint estimate."""
    pad = lambda c: _round_up(max(c, 1), _LANE)
    est = 2 * tb * pad(d) * in_itemsize              # double-buffered state tiles
    est += 2 * tb * pad(out_w) * out_itemsize        # double-buffered output tiles
    est += 2 * slab_shape[0] * pad(slab_shape[1]) * 4  # resident param slab (conservative x2)
    return est


def macro_policy_forward(state, packed, *, agent='A', return_features=True,
                         block_batch=4096, io_dtype=jnp.float32):
    """Fused forward.  `packed` must come from pack_params() (built once)."""
    slab, offs, D, H = packed
    ball_col = 12 if agent == 'A' else 13
    out_w = (H + HEAD_OUT) if return_features else HEAD_OUT
    io_dtype = jax.dtypes.canonicalize_dtype(io_dtype)

    if state.dtype != io_dtype:
        state = state.astype(io_dtype)

    # No full-array pad / output slice on the hot path: grid = cdiv(B, TB) and
    # Pallas masks the ragged last tile.  Only B < 8 pads (<= 7 rows).
    B = state.shape[0]
    pad_rows = 8 - B if B < 8 else 0
    if pad_rows:
        state = jnp.pad(state, ((0, pad_rows), (0, 0)))
    b_eff = B + pad_rows

    # TB: multiple of 8, <= block_batch, and <= round_up(ceil(B/2), 8) so the
    # grid has >= 2 steps whenever B >= 16 (v7x megacore batch split).
    tb = max(8, min(_round_up(block_batch, 8), _round_up(pl.cdiv(b_eff, 2), 8)))
    in_itemsize = io_dtype.itemsize
    out_itemsize = io_dtype.itemsize
    while tb > 8 and _tile_vmem_bytes(tb, D, out_w, slab.shape,
                                      in_itemsize, out_itemsize) > _VMEM_BUDGET_BYTES:
        tb = max(8, _round_up(tb // 2, 8))
    vmem_limit = int(min(64 << 20,
                         max(2 * _tile_vmem_bytes(tb, D, out_w, slab.shape,
                                                  in_itemsize, out_itemsize),
                             32 << 20)))
    grid = (pl.cdiv(b_eff, tb),)

    cost = pl.CostEstimate(
        flops=2 * b_eff * (D * H + H * H + H * HEADS_W),
        transcendentals=0,
        bytes_accessed=(b_eff * D * in_itemsize + b_eff * out_w * out_itemsize
                        + slab.size * slab.dtype.itemsize))

    kernel = functools.partial(_macro_policy_kernel, D, H, ball_col,
                               return_features, offs)

    out = pl.pallas_call(
        kernel,
        out_shape=jax.ShapeDtypeStruct((b_eff, out_w), io_dtype),
        grid=grid,
        in_specs=[
            pl.BlockSpec((tb, D), lambda i: (i, 0)),        # state tile (streamed)
            pl.BlockSpec(slab.shape, lambda i: (0, 0)),     # param slab (resident)
        ],
        out_specs=pl.BlockSpec((tb, out_w), lambda i: (i, 0)),
        compiler_params=pltpu.CompilerParams(
            dimension_semantics=("parallel",),              # megacore batch split
            vmem_limit_bytes=vmem_limit),
        cost_estimate=cost,
    )(state, slab)

    if pad_rows:
        out = out[:B]
    if return_features:
        x = out[:, 0:H]
        head = out[:, H:H + HEAD_OUT]
    else:
        x = None
        head = out
    logits = head[:, 0:3]
    # NOTE: unrouted rows of a param head are 0, matching the PyTorch
    # zero-initialized buffers; all three heads are always returned.
    param_outputs = {'move': head[:, 3:5],
                     'shoot': head[:, 5:6],
                     'intercept': head[:, 6:8]}
    return x, logits, param_outputs


def init_params(key, input_dim, hidden_dim):
    """Deterministic PyTorch-Linear-style (uniform +-1/sqrt(fan_in)) init.

    All Linear weights are stored transposed vs PyTorch, i.e. [in, out].
    """
    def lin(k, fan_in, fan_out):
        kw, kb = jax.random.split(k)
        bound = 1.0 / (fan_in ** 0.5)
        w = jax.random.uniform(kw, (fan_in, fan_out), jnp.float32, -bound, bound)
        b = jax.random.uniform(kb, (1, fan_out), jnp.float32, -bound, bound)
        return w, b

    keys = jax.random.split(key, 8)
    p = {}
    p['w1'], p['b1'] = lin(keys[0], input_dim, hidden_dim)
    p['w2'], p['b2'] = lin(keys[1], hidden_dim, hidden_dim)
    p['w_macro_with'], p['b_macro_with'] = lin(keys[2], hidden_dim, len(MACRO_ACTIONS_W))
    p['w_macro_without'], p['b_macro_without'] = lin(keys[3], hidden_dim, len(MACRO_ACTIONS_WO))
    p['w_move_with'], p['b_move_with'] = lin(keys[4], hidden_dim, 2)
    p['w_shoot'], p['b_shoot'] = lin(keys[5], hidden_dim, 1)
    p['w_move_without'], p['b_move_without'] = lin(keys[6], hidden_dim, 2)
    p['w_intercept'], p['b_intercept'] = lin(keys[7], hidden_dim, 2)
    return p


def _reference_forward(state, params, agent='A'):
    """Pure-JAX reference mirroring the PyTorch semantics (for validation)."""
    ball_col = 12 if agent == 'A' else 13
    h1 = jnp.maximum(state @ params['w1'] + params['b1'], 0.0)
    x = jnp.maximum(h1 @ params['w2'] + params['b2'], 0.0)
    has_ball = (state[:, ball_col] == 1.0)[:, None]
    lw = x @ params['w_macro_with'] + params['b_macro_with']
    lwo = x @ params['w_macro_without'] + params['b_macro_without']
    neg_inf = jnp.float32(-jnp.inf)
    logits = jnp.concatenate([
        jnp.where(has_ball, lw[:, 0:1], lwo[:, 0:1]),
        jnp.where(has_ball, lw[:, 1:2], neg_inf),
        jnp.where(has_ball, neg_inf, lwo[:, 1:2]),
    ], axis=1)
    move = jnp.where(has_ball,
                     x @ params['w_move_with'] + params['b_move_with'],
                     x @ params['w_move_without'] + params['b_move_without'])
    shoot = jnp.where(has_ball, x @ params['w_shoot'] + params['b_shoot'], 0.0)
    intercept = jnp.where(has_ball, 0.0,
                          x @ params['w_intercept'] + params['b_intercept'])
    return x, logits, {'move': move, 'shoot': shoot, 'intercept': intercept}


if __name__ == "__main__":
    key = jax.random.PRNGKey(0)
    kp, ks1, ks2 = jax.random.split(key, 3)

    input_dim, hidden_dim = 16, 32   # input_dim >= 14 (has_ball flag at col 12/13)
    params = init_params(kp, input_dim, hidden_dim)
    packed = pack_params(params)     # built ONCE, hoisted out of the hot path

    def make_state(k, b):
        s = jax.random.normal(k, (b, input_dim), jnp.float32)
        flags = (jnp.arange(b) % 2 == 0).astype(jnp.float32)   # exact 0/1 ball flag
        return s.at[:, 12].set(flags)

    # --- check 1: small batch, f32, jitted wrapper with pre-packed params -----
    B = 8
    state = make_state(ks1, B)
    fwd = jax.jit(functools.partial(macro_policy_forward, packed=packed, agent='A'))
    x, logits, po = fwd(state)
    jax.block_until_ready((x, logits, po))
    x_r, logits_r, po_r = _reference_forward(state, params, agent='A')
    assert jnp.allclose(x, x_r, atol=1e-5)
    assert jnp.allclose(logits, logits_r, atol=1e-5)
    for name in ('move', 'shoot', 'intercept'):
        assert jnp.allclose(po[name], po_r[name], atol=1e-5)

    # --- check 2: ragged batch, multi-step grid (no pad / no slice hot path) ---
    B2 = 100
    state2 = make_state(ks2, B2)
    x2, logits2, po2 = macro_policy_forward(state2, packed, agent='A', block_batch=32)
    jax.block_until_ready((x2, logits2, po2))
    x2_r, logits2_r, po2_r = _reference_forward(state2, params, agent='A')
    assert jnp.allclose(x2, x2_r, atol=1e-5)
    assert jnp.allclose(logits2, logits2_r, atol=1e-5)
    for name in ('move', 'shoot', 'intercept'):
        assert jnp.allclose(po2[name], po2_r[name], atol=1e-5)

    # --- check 3: bf16 activation I/O, features dropped (8-lane output path) ---
    xb, logits_b, po_b = macro_policy_forward(state2, packed, agent='A',
                                              return_features=False,
                                              io_dtype=jnp.bfloat16)
    jax.block_until_ready((logits_b, po_b))
    assert xb is None
    assert jnp.allclose(logits_b.astype(jnp.float32), logits2_r, atol=0.25, rtol=0.05)
    assert jnp.allclose(po_b['move'].astype(jnp.float32), po2_r['move'],
                        atol=0.25, rtol=0.05)

    print("KERNEL_OK")
</pallas_src>

<mosaic_0001>
module attributes {stable_mosaic.version = 11 : i64} {
  func.func @_macro_policy_kernel(%arg0: i32, %arg1: memref<8x16xf32, #tpu.memory_space<vmem>>, %arg2: memref<104x32xf32, #tpu.memory_space<vmem>>, %arg3: memref<8x40xf32, #tpu.memory_space<vmem>>) attributes {dimension_semantics = [#tpu.dimension_semantics<parallel>], iteration_bounds = array<i64: 1>, scalar_prefetch = 0 : i64, scratch_operands = 0 : i64, tpu.core_type = #tpu.core_type<tc>, window_params = [{transform_indices = @transform_0, window_bounds = array<i64: 8, 16>}, {pipeline_mode = #tpu.pipeline_mode<synchronous>, transform_indices = @transform_1, window_bounds = array<i64: 104, 32>}, {transform_indices = @transform_2, window_bounds = array<i64: 8, 40>}]} {
    %c0 = arith.constant 0 : index
    %c0_0 = arith.constant 0 : index
    %0 = vector.load %arg1[%c0, %c0_0] : memref<8x16xf32, #tpu.memory_space<vmem>>, vector<8x16xf32>
    %c0_1 = arith.constant 0 : index
    %c0_2 = arith.constant 0 : index
    %1 = vector.load %arg2[%c0_1, %c0_2] : memref<104x32xf32, #tpu.memory_space<vmem>>, vector<16x32xf32>
    %c16 = arith.constant 16 : index
    %c0_3 = arith.constant 0 : index
    %2 = vector.load %arg2[%c16, %c0_3] : memref<104x32xf32, #tpu.memory_space<vmem>>, vector<32x32xf32>
    %c48 = arith.constant 48 : index
    %c0_4 = arith.constant 0 : index
    %3 = vector.load %arg2[%c48, %c0_4] : memref<104x32xf32, #tpu.memory_space<vmem>>, vector<32x16xf32>
    %c80 = arith.constant 80 : index
    %c0_5 = arith.constant 0 : index
    %4 = vector.load %arg2[%c80, %c0_5] : memref<104x32xf32, #tpu.memory_space<vmem>>, vector<1x32xf32>
    %c88 = arith.constant 88 : index
    %c0_6 = arith.constant 0 : index
    %5 = vector.load %arg2[%c88, %c0_6] : memref<104x32xf32, #tpu.memory_space<vmem>>, vector<1x32xf32>
    %c96 = arith.constant 96 : index
    %c0_7 = arith.constant 0 : index
    %6 = vector.load %arg2[%c96, %c0_7] : memref<104x32xf32, #tpu.memory_space<vmem>>, vector<1x16xf32>
    %cst = arith.constant dense<0.000000e+00> : vector<8x32xf32>
    %7 = tpu.matmul %0, %1, %cst {dimension_numbers = #tpu.dot_dimension_numbers<[1], [0], [0], [1], [0, 0, 1, 1], [], []>} : vector<8x16xf32>, vector<16x32xf32>, vector<8x32xf32> -> vector<8x32xf32>
    %8 = vector.broadcast %4 : vector<1x32xf32> to vector<8x32xf32>
    %9 = arith.addf %7, %8 : vector<8x32xf32>
    %cst_8 = arith.constant 0.000000e+00 : f32
    %10 = vector.broadcast %cst_8 : f32 to vector<8x32xf32>
    %11 = arith.maximumf %9, %10 : vector<8x32xf32>
    %cst_9 = arith.constant dense<0.000000e+00> : vector<8x32xf32>
    %12 = tpu.matmul %11, %2, %cst_9 {dimension_numbers = #tpu.dot_dimension_numbers<[1], [0], [0], [1], [0, 0, 1, 1], [], []>} : vector<8x32xf32>, vector<32x32xf32>, vector<8x32xf32> -> vector<8x32xf32>
    %13 = vector.broadcast %5 : vector<1x32xf32> to vector<8x32xf32>
    %14 = arith.addf %12, %13 : vector<8x32xf32>
    %cst_10 = arith.constant 0.000000e+00 : f32
    %15 = vector.broadcast %cst_10 : f32 to vector<8x32xf32>
    %16 = arith.maximumf %14, %15 : vector<8x32xf32>
    %cst_11 = arith.constant dense<0.000000e+00> : vector<8x16xf32>
    %17 = tpu.matmul %16, %3, %cst_11 {dimension_numbers = #tpu.dot_dimension_numbers<[1], [0], [0], [1], [0, 0, 1, 1], [], []>} : vector<8x32xf32>, vector<32x16xf32>, vector<8x16xf32> -> vector<8x16xf32>
    %18 = vector.broadcast %6 : vector<1x16xf32> to vector<8x16xf32>
    %19 = arith.addf %17, %18 : vector<8x16xf32>
    %20 = vector.extract_strided_slice %0 {offsets = [0, 12], sizes = [8, 1], strides = [1, 1]} : vector<8x16xf32> to vector<8x1xf32>
    %cst_12 = arith.constant 1.000000e+00 : f32
    %21 = vector.broadcast %cst_12 : f32 to vector<8x1xf32>
    %22 = arith.cmpf oeq, %20, %21 : vector<8x1xf32>
    %23 = vector.extract_strided_slice %19 {offsets = [0, 0], sizes = [8, 8], strides = [1, 1]} : vector<8x16xf32> to vector<8x8xf32>
    %24 = vector.extract_strided_slice %19 {offsets = [0, 8], sizes = [8, 8], strides = [1, 1]} : vector<8x16xf32> to vector<8x8xf32>
    %25 = vector.shape_cast %22 : vector<8x1xi1> to vector<8x1xi1>
    %26 = vector.broadcast %25 : vector<8x1xi1> to vector<8x8xi1>
    %27 = arith.select %26, %23, %24 : vector<8x8xi1>, vector<8x8xf32>
    %c0_13 = arith.constant 0 : index
    %c32 = arith.constant 32 : index
    %28 = vector.load %arg3[%c0_13, %c32] : memref<8x40xf32, #tpu.memory_space<vmem>>, vector<8x8xf32>
    tpu.vector_store %arg3[%c0_13, %c32], %27 {strides = array<i32>} : memref<8x40xf32, #tpu.memory_space<vmem>>, vector<8x8xf32>,
    %c0_14 = arith.constant 0 : index
    %c0_15 = arith.constant 0 : index
    %29 = vector.load %arg3[%c0_14, %c0_15] : memref<8x40xf32, #tpu.memory_space<vmem>>, vector<8x32xf32>
    tpu.vector_store %arg3[%c0_14, %c0_15], %16 {strides = array<i32>} : memref<8x40xf32, #tpu.memory_space<vmem>>, vector<8x32xf32>,
    return
  }
  func.func @transform_0(%arg0: i32) -> (i32, i32) {
    %c0_i32 = arith.constant 0 : i32
    %c0_i32_0 = arith.constant 0 : i32
    return %arg0, %c0_i32 : i32, i32
  }
  func.func @transform_1(%arg0: i32) -> (i32, i32) {
    %c0_i32 = arith.constant 0 : i32
    %c0_i32_0 = arith.constant 0 : i32
    %c0_i32_1 = arith.constant 0 : i32
    return %c0_i32, %c0_i32_0 : i32, i32
  }
  func.func @transform_2(%arg0: i32) -> (i32, i32) {
    %c0_i32 = arith.constant 0 : i32
    %c0_i32_0 = arith.constant 0 : i32
    return %arg0, %c0_i32 : i32, i32
  }
}

</mosaic_0001>

<bundles_post_ra>
// kernel: macro_policy_forward.1
= control target key start
LH: loop header
LB: loop body
LE: loop exit
PB: predicated region body
PF: predicated region fallthrough
CT: control target
= control target key end

     0   :  { %7 = vsyncpa [#allocation3], 0  ;;  %s456_s0 = inlined_call_operand.hbm [shape: f32[8,16], index: 0, kind: input, shape index: {}]   ;;  %s457_s1 = inlined_call_operand.hbm [shape: f32[104,32], index: 1, kind: input, shape index: {}]   ;;  %s458_s2 = inlined_call_operand.vmem [shape: f32[8,40], index: 2, kind: output, shape index: {}]  }
   0x1   :  { %8 = vsyncpa [#allocation5], 0  ;;  %s413_s9 = smov [#allocation2]   ;;  %s414_s11 = smov [#allocation4]  }
   0x2   :  { %s15_s10 = sshll.u32 %s413_s9, 4  ;;  %s24_s12 = sshll.u32 %s414_s11, 4  ;;  %s16_s10 = int_to_ptr.vmem [resolvable:$true] %s15_s10  ;;  %s25_s12 = int_to_ptr.vmem [resolvable:$true] %s24_s12 }
   0x3   :  { %s377_s13 = scalar_lea.vmem %s16_s10, 128  ;;  %p382_p1 = scmp.lt.s32.totalorder %s16_s10, %s16_s10 }
   0x4   :  { %p378_p0 = scmp.ne.s32.totalorder %s16_s10, %s377_s13  ;;  %p383_p2 = scmp.lt.s32.totalorder %s377_s13, %s377_s13 }
   0x6   :  { %p384_p3 = por %p383_p2, %p382_p1 }
   0x8   :  { %p385_p4 = pnand %p384_p3, %p378_p0 }
   0xa   :  { %388 = shalt.err (!%p385_p4)
}
   0xb   :  { %18 = dma.hbm_to_vmem [thread:$0]  %s456_s0, 128, %s16_s10, [#allocation3]  }
   0xc   :  { %s397_s16 = scalar_lea.vmem %s25_s12, 1664  ;;  %p402_p6 = scmp.lt.s32.totalorder %s25_s12, %s25_s12 }
   0xd   :  { %p398_p5 = scmp.ne.s32.totalorder %s25_s12, %s397_s16  ;;  %p403_p7 = scmp.lt.s32.totalorder %s397_s16, %s397_s16 }
   0xf   :  { %p404_p8 = por %p403_p7, %p402_p6 }
  0x11   :  { %p405_p9 = pnand %p404_p8, %p398_p5 }
  0x13   :  { %408 = shalt.err (!%p405_p9)
}
  0x14   :  { %s415_s17 = smov 128   ;;  %s416_s18 = smov 8  }
  0x15   :  { %30 = dma.hbm_to_vmem [thread:$0]  %s457_s1, 1664, %s25_s12, [#allocation5], %s415_s17, %s415_s17, %s416_s18  }
  0x16   :  { %409 = dma.done.wait [#allocation3], 128  }
  0x17   :  { %410 = vsyncadd [#allocation3], 4294967168 }
  0x18   :  { %411 = dma.done.wait [#allocation5], 1664  }
  0x19   :  { %412 = vsyncadd [#allocation5], 4294965632  ;;  %v417_v0 = vmov 0.0   ;;  %vm418_vm0 = vmmov 0   ;;  %v39_v1 = vld [vmem:[#allocation4 + $0x8] sm:$0xff]  ;;  %v38_v2 = vld [vmem:[#allocation4] sm:$0xff] }
  0x1a   :  { %329 = vmatprep.subr.mxu0 %v417_v0  ;;  %333 = vmatprep.mubr.msk.f32.mxu0 %vm418_vm0, %v417_v0  ;;  %v37_v3 = vld [vmem:[#allocation2] sm:$0xff]  ;;  %vm55_vm1 = vcmask 130048   ;;  %v43_v4 = vld [vmem:[#allocation4 + $0x28] sm:$0xff]  ;;  %v42_v5 = vld [vmem:[#allocation4 + $0x20] sm:$0xff]  ;;  %vm134_vm2 = vcmask 261120   ;;  %v419_v17 = vmov 12  }
  0x1b   :  { %336 = vmatprep.subr.mxu1 %v417_v0  ;;  %344 = vmatprep.mubr.msk.f32.mxu1 %vm418_vm0, %v417_v0  ;;  %v41_v6 = vld [vmem:[#allocation4 + $0x18] sm:$0xff]  ;;  %v40_v7 = vld [vmem:[#allocation4 + $0x10] sm:$0xff]  ;;  %v47_v8 = vld [vmem:[#allocation4 + $0x48] sm:$0xff]  ;;  %vm286_vm3 = vcmp.eq.f32.partialorder %v37_v3, 1.0  ;;  %v420_v18 = vmov 0   ;;  %s421_s0 = smov 120  }
  0x1c   :  { %330 = vmatpush3.msra.mxu0 %v39_v1  ;;  %337 = vmatpush3.msra.mxu1 %v43_v4  ;;  %v310_v9 = vld [vmem:[#allocation4 + $0x50] ss:$0 sm:$0xff]  ;;  %v46_v14 = vld [vmem:[#allocation4 + $0x40] sm:$0xff]  ;;  %v45_v15 = vld [vmem:[#allocation4 + $0x38] sm:$0xff]  ;;  %v287_v19 = vsel %vm286_vm3, 1, %v420_v18  ;;  %s422_s1 = smov 32  }
  0x1d   :  { %331 = vmatprep.subr.mxu0 %v417_v0  ;;  %338 = vmatprep.subr.mxu1 %v417_v0  ;;  %v44_v16 = vld [vmem:[#allocation4 + $0x30] sm:$0xff]  ;;  %v312_v20 = vld [vmem:[#allocation4 + $0x58] ss:$0 sm:$0xff]  ;;  %v314_v25 = vld [vmem:[#allocation4 + $0x60] ss:$0 sm:$0xff]  ;;  %vm301_vm5 = vcmask 326912  }
  0x1e   :  { %332 = vmatpush3.msra.mxu0 %v38_v2  ;;  %339 = vmatpush3.msra.mxu1 %v42_v5 }
  0x1f   :  { %334 = vmatmul.mubr.msk.f32.vlgmr.msra.gmra.mxu0 %vm55_vm1, %v37_v3  ;;  %347 = vmatprep.subr.mxu0 %v417_v0 }
  0x20   :  { %355 = vmatprep.mubr.msk.f32.mxu0 %vm418_vm0, %v417_v0  ;;  %340 = vmatprep.subr.mxu1 %v417_v0 }
  0x21   :  { %341 = vmatpush3.msra.mxu1 %v41_v6  ;;  %348 = vmatpush3.msra.mxu0 %v47_v8 }
  0x22   :  { %342 = vmatprep.subr.mxu1 %v417_v0  ;;  %349 = vmatprep.subr.mxu0 %v417_v0 }
  0x23   :  { %343 = vmatpush3.msra.mxu1 %v40_v7  ;;  %350 = vmatpush3.msra.mxu0 %v46_v14 }
  0x24   :  { %351 = vmatprep.subr.mxu0 %v417_v0  ;;  %368 = vset.pattern.permute.xlu0 %v419_v17 }
  0x25   :  { %352 = vmatpush3.msra.mxu0 %v45_v15  ;;  %289 = vperm.xlu0 %368, %v287_v19  }
  0x26   :  { %353 = vmatprep.subr.mxu0 %v417_v0 }
  0x27   :  { %354 = vmatpush3.msra.mxu0 %v44_v16 }
  0xa0   :  { %v290_v29 = vpop.permute.xlu0 %289 }
  0xa1   :  { %vm291_vm4 = vcmp.eq.s32.totalorder %v290_v29, 1 }
  0xdf   :  { %v125_v10 = vpop.f32.mrf.mxu0 }
  0xe0   :  { %v126_v11 = vadd.f32 %v310_v9, %v125_v10 }
  0xe1   :  { %v335_v12 = vpop.f32.mrf.mxu0 }
  0xe2   :  { %v129_v13 = vmax.f32 %v126_v11, 0.0 }
  0xe4   :  { %345 = vmatmul.mubr.msk.f32.vlgmr.msra.gmra.mxu1 %vm134_vm2, %v129_v13 }
 0x1a4   :  { %v204_v21 = vpop.f32.mrf.mxu1 }
 0x1a5   :  { %v205_v22 = vadd.f32 %v312_v20, %v204_v21 }
 0x1a6   :  { %v346_v23 = vpop.f32.mrf.mxu1 }
 0x1a7   :  { %v208_v24 = vmax.f32 %v205_v22, 0.0 }
 0x1a9   :  { %356 = vmatmul.mubr.msk.f32.vlgmr.msra.gmra.mxu0 %vm134_vm2, %v208_v24 }
 0x269   :  { %v282_v26 = vpop.f32.mrf.mxu0 }
 0x26a   :  { %v283_v27 = vadd.f32 %v314_v25, %v282_v26 }
 0x26b   :  { %v357_v28 = vpop.f32.mrf.mxu0 }
 0x26c   :  { %293 = vrot.lane.b32.xlu0 %v283_v27, %s421_s0 }
 0x2de   :  { %v294_v30 = vpop.permute.xlu0 %293 }
 0x2df   :  { %v296_v31 = vsel %vm291_vm4, %v283_v27, %v294_v30 }
 0x2e0   :  { %298 = vrot.lane.b32.xlu1 %v296_v31, %s422_s1 }
 0x352   :  { %v299_v32 = vpop.permute.xlu1 %298 }
 0x353   :  { %302 = vst.msk [vmem:[%s458_s2] sm:$0xff] %vm301_vm5, %v299_v32 }
 0x354   :  { %303 = vst.msk [vmem:[%s458_s2] sm:$0xff] %vm134_vm2, %v208_v24 }
 0x355   :  { %308 = vsyncpa [#allocation3], 1 }
 0x356   :  { %309 = vsyncpa [#allocation5], 1 }

</bundles_post_ra>
